<compile_context>
chip_gen: v7x
topology: tpu7x:2x2x1
jax: 0.10.0
libtpu: 0.0.40
codegen_flags: <defaults>
</compile_context>

<pallas_src>
import jax
import jax.numpy as jnp
import numpy as np
from jax import lax
from jax.experimental import pallas as pl
from jax.experimental.pallas import tpu as pltpu


def _round_up(x, m):
    return ((x + m - 1) // m) * m


def _block_bytes(shape, dtype):
    """Approximate VMEM bytes of one block incl. (sublane, 128) padding."""
    itemsize = int(np.dtype(dtype).itemsize)
    sub_tile = 8 * max(1, 4 // itemsize)          # f32: 8, bf16: 16, i8: 32
    *lead, sub, lane = shape
    sub = _round_up(max(sub, 1), sub_tile)
    lane = _round_up(max(lane, 1), 128)
    n = 1
    for d in lead:
        n *= int(d)
    return n * sub * lane * itemsize


def _vmem_cap_bytes():
    """Per-generation scoped-VMEM request (<= physical with headroom)."""
    try:
        phys = int(pltpu.get_tpu_info().vmem_capacity_bytes)
    except Exception:
        phys = 64 << 20                            # conservative (v7x per-TC)
    if phys <= (64 << 20):
        return 48 << 20                            # v7x: 64 MiB physical
    return 100 << 20                               # v5e/v6e: 128 MiB physical


# ---------------------------------------------------------------------------
# Fused single-pass kernel: one graph per grid step, evecs read once.
# ---------------------------------------------------------------------------
def _fused_kernel(evecs_ref, x_ref, mass_ref, evals_ref, t_ref, out_ref):
    evecs = evecs_ref[...]                                     # (N, K) bf16
    # mass-fold + bf16 cast in VMEM (free filler under the DMA-bound roofline)
    xm = (x_ref[...] * mass_ref[...]).astype(jnp.bfloat16)     # (N, D)
    # Contract over the vertex (sublane) axis directly -> no evecs^T copy.
    spec = lax.dot_general(
        evecs, xm,
        dimension_numbers=(((0,), (0,)), ((), ())),
        preferred_element_type=jnp.float32)                    # (K, D)
    t = jnp.maximum(t_ref[...], 1e-8)                          # clamp(diffusion_time)
    coefs = jnp.exp(-evals_ref[...] * t)                       # (K,1)*(1,D) -> (K,D)
    spec = (coefs * spec).astype(jnp.bfloat16)
    out_ref[...] = jnp.dot(
        evecs, spec, preferred_element_type=jnp.float32).astype(out_ref.dtype)


# ---------------------------------------------------------------------------
# Streamed phase 1: projection into the spectral basis + diffusion coefs.
#   spec[b] = exp(-evals[b] * clamp(t)) * sum_over_N_tiles evecs_tile^T @ (mass*x)_tile
# ---------------------------------------------------------------------------
def _project_kernel(evecs_ref, x_ref, mass_ref, evals_ref, t_ref, spec_ref, acc_ref):
    j = pl.program_id(1)

    @pl.when(j == 0)
    def _init():
        acc_ref[...] = jnp.zeros_like(acc_ref)

    xm = (x_ref[...] * mass_ref[...]).astype(jnp.bfloat16)     # (TN, D)
    # (TN, K)^T @ (TN, D) -> (K, D), f32 accumulation on the MXU.
    acc_ref[...] += lax.dot_general(
        evecs_ref[...], xm,
        dimension_numbers=(((0,), (0,)), ((), ())),
        preferred_element_type=jnp.float32)

    @pl.when(j == pl.num_programs(1) - 1)
    def _finalize():
        t = jnp.maximum(t_ref[...], 1e-8)                      # (1, D)
        coefs = jnp.exp(-evals_ref[...] * t)                   # (K, D)
        spec_ref[...] = (coefs * acc_ref[...]).astype(spec_ref.dtype)


# ---------------------------------------------------------------------------
# Streamed phase 2: reconstruction back to the vertex domain.
#   out_tile = evecs_tile @ spec[b]                            (TN, D)
# ---------------------------------------------------------------------------
def _reconstruct_kernel(evecs_ref, spec_ref, out_ref):
    out_ref[...] = jnp.dot(
        evecs_ref[...], spec_ref[...],
        preferred_element_type=jnp.float32).astype(out_ref.dtype)


def _choose_tn(N, K, D, tn_req, budget, x_dtype, out_dtype):
    """Largest N-tile (multiple of 128) whose two-phase blocks fit `budget`."""
    TN = max(128, min(_round_up(tn_req, 128), _round_up(N, 128)))

    def est(tn):
        p1 = (2 * (_block_bytes((tn, K), jnp.bfloat16)         # evecs tile
                   + _block_bytes((tn, D), x_dtype)            # x tile
                   + _block_bytes((tn, 1), jnp.float32)        # mass tile
                   + _block_bytes((K, 1), jnp.float32)         # evals
                   + _block_bytes((1, D), jnp.float32)         # t
                   + _block_bytes((K, D), jnp.bfloat16))       # spec out
              + _block_bytes((K, D), jnp.float32)              # f32 accumulator
              + _block_bytes((tn, D), jnp.bfloat16)            # xm temporary
              + (4 << 20))
        p2 = (2 * (_block_bytes((tn, K), jnp.bfloat16)
                   + _block_bytes((K, D), jnp.bfloat16)
                   + _block_bytes((tn, D), out_dtype))
              + _block_bytes((tn, D), jnp.float32)              # matmul f32 temp
              + (4 << 20))
        return max(p1, p2)

    while TN > 128 and est(TN) > budget:
        TN = max(128, ((TN // 2) // 128) * 128)
    if est(TN) > budget:
        raise ValueError(
            f"LearnedTimeDiffusion: blocks do not fit the VMEM budget "
            f"({budget} bytes) even at TN=128 (K={K}, D={D}); reduce K or D.")
    # Rebalance TN so the last tile is as full as possible (less padding).
    nt = pl.cdiv(N, TN)
    TN = min(TN, max(128, _round_up(pl.cdiv(N, nt), 128)))
    return TN


def learned_time_diffusion(x, mass, evals, evecs, diffusion_time, *,
                           tn=8192, force_streamed=False):
    """x:(B,N,D) mass:(B,N,1) evals:(B,K,1) evecs:(B,N,K) diffusion_time:(D,)"""
    B, N, D = x.shape
    K = evecs.shape[-1]
    out_dtype = x.dtype

    cap = _vmem_cap_bytes()          # scoped-VMEM limit we request
    budget = cap - (8 << 20)         # selection threshold (slack under the limit)

    # evecs is fixed per mesh in DiffusionNet: its one-time bf16 cast amortizes
    # across all blocks (pass bf16 evecs from the caller to skip it entirely).
    evecs_bf = evecs if evecs.dtype == jnp.bfloat16 else evecs.astype(jnp.bfloat16)
    mass_f = mass if mass.dtype == jnp.float32 else mass.astype(jnp.float32)
    evals_f = evals if evals.dtype == jnp.float32 else evals.astype(jnp.float32)
    t2d = diffusion_time.reshape(1, D).astype(jnp.float32)

    # ---------------- fused single-pass path (evecs read once) -------------
    fused_est = (2 * (_block_bytes((N, K), jnp.bfloat16)
                      + _block_bytes((N, D), x.dtype)
                      + _block_bytes((N, 1), jnp.float32)
                      + _block_bytes((K, 1), jnp.float32)
                      + _block_bytes((1, D), jnp.float32)
                      + _block_bytes((N, D), out_dtype))
                 + _block_bytes((N, D), jnp.bfloat16)     # xm temporary
                 + _block_bytes((K, D), jnp.float32)      # spec temporary
                 + _block_bytes((N, D), jnp.float32)      # pre-cast output
                 + (4 << 20))

    if (not force_streamed) and fused_est <= budget:
        return pl.pallas_call(
            _fused_kernel,
            out_shape=jax.ShapeDtypeStruct((B, N, D), out_dtype),
            grid_spec=pltpu.PrefetchScalarGridSpec(
                num_scalar_prefetch=0,
                grid=(B,),
                in_specs=[
                    pl.BlockSpec((None, N, K), lambda b: (b, 0, 0)),   # evecs (bf16)
                    pl.BlockSpec((None, N, D), lambda b: (b, 0, 0)),   # x
                    pl.BlockSpec((None, N, 1), lambda b: (b, 0, 0)),   # mass
                    pl.BlockSpec((None, K, 1), lambda b: (b, 0, 0)),   # evals
                    pl.BlockSpec((1, D), lambda b: (0, 0)),            # diffusion_time
                ],
                out_specs=pl.BlockSpec((None, N, D), lambda b: (b, 0, 0)),
            ),
            compiler_params=pltpu.CompilerParams(
                dimension_semantics=("parallel",),
                vmem_limit_bytes=cap,
            ),
        )(evecs_bf, x, mass_f, evals_f, t2d)

    # ---------------- streamed two-phase path (large N) --------------------
    TN = _choose_tn(N, K, D, tn, budget, x.dtype, out_dtype)
    NT = pl.cdiv(N, TN)
    Np = NT * TN

    if Np != N:
        # Zero rows contribute nothing to the projection and are sliced off at
        # the end.  Production callers should pre-pad N to a TN multiple once
        # per mesh so this per-call pass disappears.
        pad = ((0, 0), (0, Np - N), (0, 0))
        x_p = jnp.pad(x, pad)
        mass_p = jnp.pad(mass_f, pad)
        evecs_p = jnp.pad(evecs_bf, pad)
    else:
        x_p, mass_p, evecs_p = x, mass_f, evecs_bf

    # Phase 1: spectral projection (+ diffusion coefficients), N reduction
    # axis last and "arbitrary"; f32 accumulation in VMEM scratch.
    spec = pl.pallas_call(
        _project_kernel,
        out_shape=jax.ShapeDtypeStruct((B, K, D), jnp.bfloat16),
        grid_spec=pltpu.PrefetchScalarGridSpec(
            num_scalar_prefetch=0,
            grid=(B, NT),
            in_specs=[
                pl.BlockSpec((None, TN, K), lambda b, j: (b, j, 0)),   # evecs (bf16)
                pl.BlockSpec((None, TN, D), lambda b, j: (b, j, 0)),   # x
                pl.BlockSpec((None, TN, 1), lambda b, j: (b, j, 0)),   # mass
                pl.BlockSpec((None, K, 1), lambda b, j: (b, 0, 0)),    # evals
                pl.BlockSpec((1, D), lambda b, j: (0, 0)),             # diffusion_time
            ],
            out_specs=pl.BlockSpec((None, K, D), lambda b, j: (b, 0, 0)),
            scratch_shapes=[pltpu.VMEM((K, D), jnp.float32)],
        ),
        compiler_params=pltpu.CompilerParams(
            dimension_semantics=("parallel", "arbitrary"),
            vmem_limit_bytes=cap,
        ),
    )(evecs_p, x_p, mass_p, evals_f, t2d)

    # Phase 2: reconstruction; both axes independent -> shardable across cores.
    out_p = pl.pallas_call(
        _reconstruct_kernel,
        out_shape=jax.ShapeDtypeStruct((B, Np, D), out_dtype),
        grid_spec=pltpu.PrefetchScalarGridSpec(
            num_scalar_prefetch=0,
            grid=(B, NT),
            in_specs=[
                pl.BlockSpec((None, TN, K), lambda b, j: (b, j, 0)),   # evecs (bf16)
                pl.BlockSpec((None, K, D), lambda b, j: (b, 0, 0)),    # diffused spectrum
            ],
            out_specs=pl.BlockSpec((None, TN, D), lambda b, j: (b, j, 0)),
        ),
        compiler_params=pltpu.CompilerParams(
            dimension_semantics=("parallel", "parallel"),
            vmem_limit_bytes=cap,
        ),
    )(evecs_p, spec)

    return out_p if Np == N else out_p[:, :N, :]


def _reference(x, mass, evals, evecs, diffusion_time):
    """Plain-JAX f32 reference mirroring the PyTorch module semantics."""
    t = jnp.maximum(diffusion_time, 1e-8)                  # (D,)
    xm = x * mass                                          # (B,N,D)
    x_spec = jnp.einsum("bnk,bnd->bkd", evecs, xm)         # (B,K,D)
    coefs = jnp.exp(-evals * t[None, None, :])             # (B,K,D)
    return jnp.einsum("bnk,bkd->bnd", evecs, coefs * x_spec)


if __name__ == "__main__":
    def make_inputs(key, B, N, K, D):
        kx, km, ke, kv, kt = jax.random.split(key, 5)
        x = jax.random.normal(kx, (B, N, D), dtype=jnp.float32)
        mass = jax.random.uniform(km, (B, N, 1), dtype=jnp.float32,
                                  minval=0.5, maxval=1.5)
        evals = jnp.abs(jax.random.normal(ke, (B, K, 1), dtype=jnp.float32))
        evecs = jax.random.normal(kv, (B, N, K), dtype=jnp.float32) / jnp.sqrt(N)
        # nn.Parameter diffusion_time, init_time=0.5, init_std=2.0
        t = 0.5 + 2.0 * jax.random.normal(kt, (D,), dtype=jnp.float32)
        return x, mass, evals, evecs, t

    # 1) Small graph -> fused single-pass path.
    B, N, K, D = 2, 64, 32, 16
    x, mass, evals, evecs, t = make_inputs(jax.random.PRNGKey(0), B, N, K, D)
    out = jax.block_until_ready(learned_time_diffusion(x, mass, evals, evecs, t))
    ref = _reference(x, mass, evals, evecs, t)
    np.testing.assert_allclose(np.asarray(out), np.asarray(ref), rtol=2e-2, atol=2e-2)

    # 2) Non-tile-multiple N with a small forced tile -> streamed two-phase
    #    path (exercises accumulation, padding, bf16 spec hand-off).
    B2, N2, K2, D2 = 2, 200, 32, 16
    x2, mass2, evals2, evecs2, t2 = make_inputs(jax.random.PRNGKey(1), B2, N2, K2, D2)
    out2 = jax.block_until_ready(
        learned_time_diffusion(x2, mass2, evals2, evecs2, t2,
                               tn=128, force_streamed=True))
    ref2 = _reference(x2, mass2, evals2, evecs2, t2)
    np.testing.assert_allclose(np.asarray(out2), np.asarray(ref2), rtol=2e-2, atol=2e-2)

    print("KERNEL_OK")
</pallas_src>

<mosaic_0001>
module attributes {stable_mosaic.version = 11 : i64} {
  func.func @_fused_kernel(%arg0: i32, %arg1: memref<1x64x32xbf16, #tpu.memory_space<vmem>>, %arg2: memref<1x64x16xf32, #tpu.memory_space<vmem>>, %arg3: memref<1x64x1xf32, #tpu.memory_space<vmem>>, %arg4: memref<1x32x1xf32, #tpu.memory_space<vmem>>, %arg5: memref<1x16xf32, #tpu.memory_space<vmem>>, %arg6: memref<1x64x16xf32, #tpu.memory_space<vmem>>) attributes {dimension_semantics = [#tpu.dimension_semantics<parallel>], iteration_bounds = array<i64: 2>, scalar_prefetch = 0 : i64, scratch_operands = 0 : i64, tpu.core_type = #tpu.core_type<tc>, window_params = [{transform_indices = @transform_0, window_bounds = array<i64: 1, 64, 32>}, {transform_indices = @transform_1, window_bounds = array<i64: 1, 64, 16>}, {transform_indices = @transform_2, window_bounds = array<i64: 1, 64, 1>}, {transform_indices = @transform_3, window_bounds = array<i64: 1, 32, 1>}, {pipeline_mode = #tpu.pipeline_mode<synchronous>, transform_indices = @transform_4, window_bounds = array<i64: 1, 16>}, {transform_indices = @transform_5, window_bounds = array<i64: 1, 64, 16>}]} {
    %c0 = arith.constant 0 : index
    %c0_0 = arith.constant 0 : index
    %c0_1 = arith.constant 0 : index
    %0 = vector.load %arg1[%c0, %c0_0, %c0_1] : memref<1x64x32xbf16, #tpu.memory_space<vmem>>, vector<1x64x32xbf16>
    %1 = vector.shape_cast %0 : vector<1x64x32xbf16> to vector<64x32xbf16>
    %c0_2 = arith.constant 0 : index
    %c0_3 = arith.constant 0 : index
    %c0_4 = arith.constant 0 : index
    %2 = vector.load %arg2[%c0_2, %c0_3, %c0_4] : memref<1x64x16xf32, #tpu.memory_space<vmem>>, vector<1x64x16xf32>
    %3 = vector.shape_cast %2 : vector<1x64x16xf32> to vector<64x16xf32>
    %c0_5 = arith.constant 0 : index
    %c0_6 = arith.constant 0 : index
    %c0_7 = arith.constant 0 : index
    %4 = vector.load %arg3[%c0_5, %c0_6, %c0_7] : memref<1x64x1xf32, #tpu.memory_space<vmem>>, vector<1x64x1xf32>
    %5 = vector.shape_cast %4 : vector<1x64x1xf32> to vector<64x1xf32>
    %6 = vector.broadcast %5 : vector<64x1xf32> to vector<64x16xf32>
    %7 = arith.mulf %3, %6 : vector<64x16xf32>
    %8 = arith.truncf %7 : vector<64x16xf32> to vector<64x16xbf16>
    %cst = arith.constant dense<0.000000e+00> : vector<32x16xf32>
    %9 = tpu.matmul %1, %8, %cst {dimension_numbers = #tpu.dot_dimension_numbers<[0], [0], [1], [1], [0, 1, 1, 1], [], []>} : vector<64x32xbf16>, vector<64x16xbf16>, vector<32x16xf32> -> vector<32x16xf32>
    %c0_8 = arith.constant 0 : index
    %c0_9 = arith.constant 0 : index
    %10 = vector.load %arg5[%c0_8, %c0_9] : memref<1x16xf32, #tpu.memory_space<vmem>>, vector<1x16xf32>
    %cst_10 = arith.constant 9.99999993E-9 : f32
    %11 = vector.broadcast %cst_10 : f32 to vector<1x16xf32>
    %12 = arith.maximumf %10, %11 : vector<1x16xf32>
    %c0_11 = arith.constant 0 : index
    %c0_12 = arith.constant 0 : index
    %c0_13 = arith.constant 0 : index
    %13 = vector.load %arg4[%c0_11, %c0_12, %c0_13] : memref<1x32x1xf32, #tpu.memory_space<vmem>>, vector<1x32x1xf32>
    %14 = vector.shape_cast %13 : vector<1x32x1xf32> to vector<32x1xf32>
    %cst_14 = arith.constant 0.000000e+00 : f32
    %15 = vector.broadcast %cst_14 : f32 to vector<32x1xf32>
    %16 = arith.subf %15, %14 : vector<32x1xf32>
    %17 = vector.broadcast %16 : vector<32x1xf32> to vector<32x16xf32>
    %18 = vector.broadcast %12 : vector<1x16xf32> to vector<32x16xf32>
    %19 = arith.mulf %17, %18 : vector<32x16xf32>
    %20 = math.exp %19 : vector<32x16xf32>
    %21 = arith.mulf %20, %9 : vector<32x16xf32>
    %22 = arith.truncf %21 : vector<32x16xf32> to vector<32x16xbf16>
    %cst_15 = arith.constant dense<0.000000e+00> : vector<64x16xf32>
    %23 = tpu.matmul %1, %22, %cst_15 {dimension_numbers = #tpu.dot_dimension_numbers<[1], [0], [0], [1], [0, 0, 1, 1], [], []>} : vector<64x32xbf16>, vector<32x16xbf16>, vector<64x16xf32> -> vector<64x16xf32>
    %c0_16 = arith.constant 0 : index
    %c0_17 = arith.constant 0 : index
    %c0_18 = arith.constant 0 : index
    %24 = vector.load %arg6[%c0_16, %c0_17, %c0_18] : memref<1x64x16xf32, #tpu.memory_space<vmem>>, vector<1x64x16xf32>
    %25 = vector.shape_cast %24 : vector<1x64x16xf32> to vector<64x16xf32>
    %26 = vector.shape_cast %23 : vector<64x16xf32> to vector<1x64x16xf32>
    tpu.vector_store %arg6[%c0_16, %c0_17, %c0_18], %26 {strides = array<i32>} : memref<1x64x16xf32, #tpu.memory_space<vmem>>, vector<1x64x16xf32>,
    return
  }
  func.func @transform_0(%arg0: i32) -> (i32, i32, i32) {
    %c0_i32 = arith.constant 0 : i32
    %c0_i32_0 = arith.constant 0 : i32
    %c0_i32_1 = arith.constant 0 : i32
    return %arg0, %c0_i32, %c0_i32_0 : i32, i32, i32
  }
  func.func @transform_1(%arg0: i32) -> (i32, i32, i32) {
    %c0_i32 = arith.constant 0 : i32
    %c0_i32_0 = arith.constant 0 : i32
    %c0_i32_1 = arith.constant 0 : i32
    return %arg0, %c0_i32, %c0_i32_0 : i32, i32, i32
  }
  func.func @transform_2(%arg0: i32) -> (i32, i32, i32) {
    %c0_i32 = arith.constant 0 : i32
    %c0_i32_0 = arith.constant 0 : i32
    %c0_i32_1 = arith.constant 0 : i32
    return %arg0, %c0_i32, %c0_i32_0 : i32, i32, i32
  }
  func.func @transform_3(%arg0: i32) -> (i32, i32, i32) {
    %c0_i32 = arith.constant 0 : i32
    %c0_i32_0 = arith.constant 0 : i32
    %c0_i32_1 = arith.constant 0 : i32
    return %arg0, %c0_i32, %c0_i32_0 : i32, i32, i32
  }
  func.func @transform_4(%arg0: i32) -> (i32, i32) {
    %c0_i32 = arith.constant 0 : i32
    %c0_i32_0 = arith.constant 0 : i32
    %c0_i32_1 = arith.constant 0 : i32
    return %c0_i32, %c0_i32_0 : i32, i32
  }
  func.func @transform_5(%arg0: i32) -> (i32, i32, i32) {
    %c0_i32 = arith.constant 0 : i32
    %c0_i32_0 = arith.constant 0 : i32
    %c0_i32_1 = arith.constant 0 : i32
    return %arg0, %c0_i32, %c0_i32_0 : i32, i32, i32
  }
}

</mosaic_0001>

<bundles_post_ra>
// kernel: tpu_custom_call.1
= control target key start
LH: loop header
LB: loop body
LE: loop exit
PB: predicated region body
PF: predicated region fallthrough
CT: control target
= control target key end

     0   :  { %s820_s18 = smov 0   ;;  %s878_s0 = inlined_call_operand.vmem [shape: bf16[2,64,32], index: 0, kind: input, shape index: {}]   ;;  %s879_s1 = inlined_call_operand.vmem [shape: f32[2,64,16], index: 1, kind: input, shape index: {}]   ;;  %s880_s2 = inlined_call_operand.vmem [shape: f32[2,64,1], index: 2, kind: input, shape index: {}]   ;;  %s881_s3 = inlined_call_operand.vmem [shape: f32[2,32,1], index: 3, kind: input, shape index: {}]   ;;  %s882_s4 = inlined_call_operand.vmem [shape: f32[1,16], index: 4, kind: input, shape index: {}]   ;;  %s883_s5 = inlined_call_operand.vmem [shape: f32[2,64,16], index: 5, kind: output, shape index: {}]  }
   0x1 LB: > { %s690_s19 = sadd.s32 4294967295, %s787_s18   ;;  %p694_p0 = scmp.ge.s32.totalorder %s787_s18, 1  ;;  %s787_s18 = sphi %s820_s18, %s15_s18  }
   0x2   : > { %p217_p1 = scmp.lt.s32.totalorder %s787_s18, 3 }
   0x4   : > { %p218_p2 = pnand %p694_p0, %p217_p1 }
   0x5   : > { %p260_p3 = scmp.lt.s32.totalorder (!%p218_p2), %s690_s19, 1  ;;  %v789_v0 = vmov (!%p218_p2), 0   ;;  %vm402_vm0 = vcmask (!%p218_p2), 523264   ;;  %vm512_vm1 = vcmask (!%p218_p2), 261120   ;;  %v489_v52 = vlaneseq (!%p218_p2)  ;;  %v458_v55 = vld [vmem:[%s882_s4] sm:$0x1] (!%p218_p2) }
   0x6   : > { %221 = sbr.rel (%p218_p2) target bundleno = 620 (0x26c), region = 40  ;;  %768 = vset.pattern.permute.xlu1 (!%p218_p2), %v789_v0  ;;  %767 = vset.pattern.permute.xlu0 (!%p218_p2), %v789_v0  ;;  %v459_v56 = vmax.f32 (!%p218_p2), %v458_v55, 1e-08  ;;  %vm590_vm2 = vcmask (!%p218_p2), 130048  }
   0x7   : > { %v490_v54 = vshrl.u32 (!%p218_p2), %v489_v52, 7 }
   0x9   : > { %v491_v57 = vsub.s32 (!%p218_p2), 0, %v490_v54 }
   0xb   : > { %v492_v59 = vrot.slane (!%p218_p2), %v459_v56, %v491_v57 }
   0xd   : > { %s885_s19 = smov (!%p260_p3, %s690_s19), 1 }
   0xe   : > { %s828_s20 = sshll.u32 %s885_s19, 6  ;;  %s717_s24 = sshll.u32 %s885_s19, 5 }
   0xf   : > { %s274_s23 = scalar_lea.vmem %s880_s2, %s828_s20  ;;  %s264_s27 = scalar_lea.vmem %s878_s0, %s717_s24 }
  0x10   : > { %v304_v1 = vld [vmem:[%s274_s23 + $0x10] sm:$0xff]  ;;  %v302_v2 = vld [vmem:[%s274_s23] sm:$0xff]  ;;  %v305_v3 = vld [vmem:[%s274_s23 + $0x18] sm:$0xff]  ;;  %s279_s30 = scalar_lea.vmem %s881_s3, %s717_s24  ;;  %s269_s8 = scalar_lea.vmem %s879_s1, %s828_s20 }
  0x11   : > { %322 = vperm.xlu1 %768, %v304_v1   ;;  %312 = vperm.xlu0 %767, %v302_v2   ;;  %v303_v4 = vld [vmem:[%s274_s23 + $0x8] sm:$0xff]  ;;  %v306_v6 = vld [vmem:[%s274_s23 + $0x20] sm:$0xff]  ;;  %v309_v7 = vld [vmem:[%s274_s23 + $0x38] sm:$0xff]  ;;  %s284_s13 = scalar_lea.vmem %s883_s5, %s828_s20 }
  0x12   : > { %v307_v5 = vld [vmem:[%s274_s23 + $0x28] sm:$0xff]  ;;  %v308_v8 = vld [vmem:[%s274_s23 + $0x30] sm:$0xff]  ;;  %v460_v9 = vld [vmem:[%s279_s30] sm:$0xff] }
  0x13   : > { %v464_v10 = vsub.f32 0.0, %v460_v9  ;;  %v461_v11 = vld [vmem:[%s279_s30 + $0x8] sm:$0xff]  ;;  %v462_v13 = vld [vmem:[%s279_s30 + $0x10] sm:$0xff]  ;;  %v463_v15 = vld [vmem:[%s279_s30 + $0x18] sm:$0xff] }
  0x14   : > { %v465_v12 = vsub.f32 0.0, %v461_v11  ;;  %v466_v14 = vsub.f32 0.0, %v462_v13  ;;  %v467_v16 = vsub.f32 0.0, %v463_v15  ;;  %v769_v17 = vld [vmem:[%s264_s27] sm:$0xff]   ;;  %v840_v18 = vld [vmem:[%s264_s27 + $0x8] sm:$0xff]   ;;  %v843_v19 = vld [vmem:[%s264_s27 + $0x10] sm:$0xff]  }
  0x15   : > { %327 = vperm.xlu1 %768, %v305_v3   ;;  %317 = vperm.xlu0 %767, %v303_v4   ;;  %v846_v20 = vld [vmem:[%s264_s27 + $0x18] sm:$0xff]   ;;  %v296_v23 = vld [vmem:[%s269_s8 + $0x10] sm:$0xff]  ;;  %v294_v24 = vld [vmem:[%s269_s8] sm:$0xff] }
  0x16   : > { %v297_v25 = vld [vmem:[%s269_s8 + $0x18] sm:$0xff]  ;;  %v295_v26 = vld [vmem:[%s269_s8 + $0x8] sm:$0xff]  ;;  %v298_v34 = vld [vmem:[%s269_s8 + $0x20] sm:$0xff]  ;;  %750 = vmatprep.mubr.msk.bf16.mxu1 %vm512_vm1, %v769_v17 }
  0x17   : > { %v299_v33 = vld [vmem:[%s269_s8 + $0x28] sm:$0xff]  ;;  %v301_v41 = vld [vmem:[%s269_s8 + $0x38] sm:$0xff]  ;;  %v300_v42 = vld [vmem:[%s269_s8 + $0x30] sm:$0xff] }
  0x19   : > { %337 = vperm.xlu1 %768, %v307_v5   ;;  %332 = vperm.xlu0 %767, %v306_v6  }
  0x1d   : > { %347 = vperm.xlu1 %768, %v309_v7   ;;  %342 = vperm.xlu0 %767, %v308_v8  }
  0x21   : > { %470 = vperm.xlu1 %768, %v464_v10  }
  0x25   : > { %475 = vperm.xlu1 %768, %v465_v12  }
  0x29   : > { %480 = vperm.xlu1 %768, %v466_v14  }
  0x2d   : > { %485 = vperm.xlu1 %768, %v467_v16  }
  0x3b   : > { %386 = vxpose.xlu0.c.b16.start [1/4] (short) (narrow) %v769_v17, 32 }
  0x3f   : > { %387 = vxpose.xlu0.c.b16.cont [2/4] (short) (narrow) %v840_v18, 32 }
  0x43   : > { %388 = vxpose.xlu0.c.b16.cont [3/4] (short) (narrow) %v843_v19, 32 }
  0x47   : > { %389 = vxpose.xlu0.c.b16.end [4/4] (short) (narrow) %v846_v20, 32 }
  0x90   : > { %v323_v21 = vpop.permute.xlu1 %322  ;;  %v313_v22 = vpop.permute.xlu0 %312 }
  0x91   : > { %v352_v29 = vmul.f32 %v323_v21, %v296_v23  ;;  %v350_v30 = vmul.f32 %v313_v22, %v294_v24 }
  0x94   : > { %v328_v27 = vpop.permute.xlu1 %327  ;;  %v318_v28 = vpop.permute.xlu0 %317 }
  0x95   : > { %v353_v31 = vmul.f32 %v328_v27, %v297_v25  ;;  %v351_v32 = vmul.f32 %v318_v28, %v295_v26 }
  0x97   : > { %v358_v35 = vpack.c.bf16 %v351_v32, %v350_v30  ;;  %v359_v38 = vpack.c.bf16 %v353_v31, %v352_v29 }
  0x98   : > { %v338_v36 = vpop.permute.xlu1 %337  ;;  %v333_v37 = vpop.permute.xlu0 %332 }
  0x99   : > { %v355_v39 = vmul.f32 %v338_v36, %v299_v33  ;;  %v354_v40 = vmul.f32 %v333_v37, %v298_v34  ;;  %734 = vmatprep.subr.bf16.mxu0 %v358_v35 }
  0x9a   : > { %735 = vmatpush3.bf16.msra.mxu0 %v358_v35 }
  0x9b   : > { %736 = vmatprep.subr.bf16.mxu0 %v359_v38  ;;  %v360_v45 = vpack.c.bf16 %v355_v39, %v354_v40 }
  0x9c   : > { %v348_v43 = vpop.permute.xlu1 %347  ;;  %v343_v44 = vpop.permute.xlu0 %342 }
  0x9d   : > { %v357_v46 = vmul.f32 %v348_v43, %v301_v41  ;;  %v356_v47 = vmul.f32 %v343_v44, %v300_v42 }
  0x9e   : > { %737 = vmatpush3.bf16.msra.mxu0 %v359_v38 }
  0x9f   : > { %738 = vmatprep.subr.bf16.mxu0 %v360_v45  ;;  %v361_v48 = vpack.c.bf16 %v357_v46, %v356_v47 }
  0xa0   : > { %v471_v51 = vpop.permute.xlu1 %470 }
  0xa1   : > { %v394_v49 = vpop.trf.xlu0  ;;  %v494_v61 = vmul.f32 %v492_v59, %v471_v51 }
  0xa2   : > { %739 = vmatpush3.bf16.msra.mxu0 %v360_v45  ;;  %742 = vmatprep.mubr.msk.bf16.mxu0 %vm402_vm0, %v394_v49 }
  0xa3   : > { %740 = vmatprep.subr.bf16.mxu0 %v361_v48  ;;  %v498_v1 = vmul.f32 1.442695, %v494_v61 }
  0xa4   : > { %v476_v53 = vpop.permute.xlu1 %475 }
  0xa5   : > { %v395_v50 = vpop.trf.xlu0  ;;  %v495_v0 = vmul.f32 %v492_v59, %v476_v53  ;;  %773 = vpow2.f32 %v498_v1 }
  0xa6   : > { %741 = vmatpush3.bf16.msra.mxu0 %v361_v48 }
  0xa7   : > { %v500_v4 = vmul.f32 1.442695, %v495_v0 }
  0xa8   : > { %v481_v58 = vpop.permute.xlu1 %480 }
  0xa9   : > { %743 = vmatmul.mubr.msk.bf16.vlgmr.msra.gmra.mrb[0].mxu0 %vm402_vm0, %v395_v50  ;;  %v496_v62 = vmul.f32 %v492_v59, %v481_v58 }
  0xab   : > { %v502_v2 = vmul.f32 1.442695, %v496_v62 }
  0xac   : > { %v486_v60 = vpop.permute.xlu1 %485 }
  0xad   : > { %v497_v63 = vmul.f32 %v492_v59, %v486_v60  ;;  %775 = vpow2.f32 %v502_v2 }
  0xaf   : > { %v504_v3 = vmul.f32 1.442695, %v497_v63  ;;  %v774_v5 = vpop.eup %773 }
  0xb1   : > { %777 = vpow2.f32 %v504_v3 }
  0xb2   : > { %779 = vpow2.f32 %v500_v4 }
  0xb7   : > { %v776_v7 = vpop.eup %775 }
  0xbb   : > { %v778_v9 = vpop.eup %777 }
  0xbc   : > { %v780_v11 = vpop.eup %779 }
 0x17c   : > { %v744_v6 = vpop.f32.mrb[0].mxu0 }
 0x17d   : > { %v443_v8 = vpop.f32.mrb[1].mxu0  ;;  %v508_v12 = vmul.f32 %v776_v7, %v744_v6 }
 0x17e   : > { %v745_v10 = vpop.f32.mrb[2].mxu0  ;;  %v506_v15 = vmul.f32 %v774_v5, %v443_v8 }
 0x17f   : > { %v509_v13 = vmul.f32 %v778_v9, %v745_v10  ;;  %v446_v14 = vpop.f32.mrb[3].mxu0 }
 0x180   : > { %v507_v16 = vmul.f32 %v780_v11, %v446_v14 }
 0x181   : > { %v511_v17 = vpack.c.bf16 %v509_v13, %v508_v12 }
 0x182   : > { %v510_v21 = vpack.c.bf16 %v507_v16, %v506_v15 }
 0x184   : > { %746 = vmatprep.subr.bf16.mxu1 %v510_v21 }
 0x185   : > { %747 = vmatpush3.bf16.msra.mxu1 %v510_v21 }
 0x186   : > { %748 = vmatprep.subr.bf16.mxu1 %v511_v17 }
 0x189   : > { %749 = vmatpush3.bf16.msra.mxu1 %v511_v17 }
 0x18c   : > { %751 = vmatmul.mubr.msk.bf16.vlgmr.msra.gmra.mrb[0].mxu1 %vm512_vm1, %v840_v18 }
 0x18d   : > { %754 = vmatprep.mubr.msk.bf16.mxu1 %vm512_vm1, %v843_v19 }
 0x194   : > { %755 = vmatmul.mubr.msk.bf16.gmra.mrb[4].mxu1 %vm512_vm1, %v846_v20 }
 0x25f   : > { %v752_v22 = vpop.f32.mrb[0].mxu1 }
 0x260   : > { %593 = vst.msk [vmem:[%s284_s13 + $0x10] sm:$0xff] %vm590_vm2, %v752_v22  ;;  %v559_v23 = vpop.f32.mrb[1].mxu1 }
 0x261   : > { %591 = vst.msk [vmem:[%s284_s13] sm:$0xff] %vm590_vm2, %v559_v23  ;;  %v753_v24 = vpop.f32.mrb[2].mxu1 }
 0x262   : > { %594 = vst.msk [vmem:[%s284_s13 + $0x18] sm:$0xff] %vm590_vm2, %v753_v24  ;;  %v562_v18 = vpop.f32.mrb[3].mxu1 }
 0x263   : > { %592 = vst.msk [vmem:[%s284_s13 + $0x8] sm:$0xff] %vm590_vm2, %v562_v18 }
 0x267   : > { %v756_v19 = vpop.f32.mrb[4].mxu1 }
 0x268   : > { %597 = vst.msk [vmem:[%s284_s13 + $0x30] sm:$0xff] %vm590_vm2, %v756_v19  ;;  %v575_v20 = vpop.f32.mrb[5].mxu1 }
 0x269   : > { %595 = vst.msk [vmem:[%s284_s13 + $0x20] sm:$0xff] %vm590_vm2, %v575_v20  ;;  %v757_v25 = vpop.f32.mrb[6].mxu1 }
 0x26a   : > { %598 = vst.msk [vmem:[%s284_s13 + $0x38] sm:$0xff] %vm590_vm2, %v757_v25  ;;  %v578_v26 = vpop.f32.mrb[7].mxu1 }
 0x26b   : > { %596 = vst.msk [vmem:[%s284_s13 + $0x28] sm:$0xff] %vm590_vm2, %v578_v26 }
 0x26c PF: > { %s15_s18 = sadd.s32 1, %s787_s18  }
 0x26d   : > { %p12_p4 = scmp.ge.s32.totalorder %s15_s18, 4  }
 0x26f   :  { %14 = sbr.rel (!%p12_p4) target bundleno = 1 (0x1), region = 79 }

</bundles_post_ra>
